<compile_context>
chip_gen: v5e
topology: v5e:2x2
jax: 0.10.0
libtpu: 0.0.40
codegen_flags: <defaults>
</compile_context>

<pallas_src>
import functools

import jax
import jax.numpy as jnp
from jax.experimental import pallas as pl
from jax.experimental.pallas import tpu as pltpu


def _round_up(x, m):
    return ((x + m - 1) // m) * m


def _layernorm_kernel(x_ref, w_ref, b_ref, o_ref, *, eps, hidden, hidden_p):
    # x_ref: (tile_rows, hidden_p), w_ref/b_ref: (1, hidden_p)
    x = x_ref[...].astype(jnp.float32)
    inv_h = jnp.float32(1.0 / hidden)

    # Padded lanes (>= hidden) hold zeros, so the sum over the padded width
    # equals the sum over the logical width; divide by the logical width.
    u = jnp.sum(x, axis=-1, keepdims=True) * inv_h                 # mean
    d = x - u
    if hidden_p != hidden:
        # Padded lanes of d are (-u) != 0: mask them out of the variance.
        lane = jax.lax.broadcasted_iota(jnp.int32, d.shape, dimension=1)
        d_valid = jnp.where(lane < hidden, d, 0.0)
    else:
        d_valid = d
    s = jnp.sum(d_valid * d_valid, axis=-1, keepdims=True) * inv_h  # biased var
    y = d * jax.lax.rsqrt(s + eps)

    w = w_ref[...].astype(jnp.float32)
    b = b_ref[...].astype(jnp.float32)
    o_ref[...] = (w * y + b).astype(o_ref.dtype)


def _vmem_plan():
    """(tile working-set budget, scoped vmem limit) per TPU generation."""
    try:
        kind = jax.devices()[0].device_kind.lower()
    except Exception:
        kind = ""
    if ("v5" in kind) or ("v6" in kind):
        # 128 MiB physical VMEM on v5e/v6e: afford bigger tiles.
        return 64 * 1024 * 1024, 96 * 1024 * 1024
    # v7x (64 MiB VMEM / TensorCore) and unknown chips: stay conservative.
    return 32 * 1024 * 1024, 48 * 1024 * 1024


def layer_norm(x, weight, bias, eps=1e-12, max_tile_rows=1024):
    """Applies LayerNorm over the last axis of x (any leading shape)."""
    orig_shape = x.shape
    hidden = orig_shape[-1]
    rows = 1
    for d in orig_shape[:-1]:
        rows *= d
    x2d = x.reshape(rows, hidden)

    itemsize = jnp.dtype(x.dtype).itemsize
    # Sublane alignment: 8 rows for f32, 16 for bf16, 32 for int8/fp8.
    row_align = max(8, 32 // itemsize)
    # Lane-dense layout: hidden padded up to a multiple of 128 lanes.
    hidden_p = max(128, _round_up(hidden, 128))

    tile_budget, vmem_limit = _vmem_plan()
    # Per-row VMEM cost: double-buffered input + output blocks plus f32 temps.
    bytes_per_row = 2 * 2 * hidden_p * itemsize + 3 * hidden_p * 4
    tile_rows = max(row_align, tile_budget // bytes_per_row)
    tile_rows = (tile_rows // row_align) * row_align
    tile_rows = min(tile_rows, max_tile_rows)
    tile_rows = min(tile_rows, _round_up(rows, row_align))

    rows_padded = _round_up(rows, tile_rows)

    # Pad rows (keeps a real grid instead of one giant block) and pad hidden
    # to the lane-dense width. Zero padding is safe: padded rows give finite,
    # discarded outputs; padded lanes are masked in the variance.
    if rows_padded != rows or hidden_p != hidden:
        x2d = jnp.pad(x2d, ((0, rows_padded - rows), (0, hidden_p - hidden)))
    w2d = jnp.pad(weight.reshape(1, hidden), ((0, 0), (0, hidden_p - hidden)))
    b2d = jnp.pad(bias.reshape(1, hidden), ((0, 0), (0, hidden_p - hidden)))

    grid = (rows_padded // tile_rows,)
    out = pl.pallas_call(
        functools.partial(
            _layernorm_kernel, eps=eps, hidden=hidden, hidden_p=hidden_p
        ),
        out_shape=jax.ShapeDtypeStruct((rows_padded, hidden_p), x.dtype),
        grid_spec=pltpu.PrefetchScalarGridSpec(
            num_scalar_prefetch=0,
            grid=grid,
            in_specs=[
                pl.BlockSpec((tile_rows, hidden_p), lambda i: (i, 0)),
                # Constant index_map -> weight/bias are DMA'd only once.
                pl.BlockSpec((1, hidden_p), lambda i: (0, 0)),
                pl.BlockSpec((1, hidden_p), lambda i: (0, 0)),
            ],
            out_specs=pl.BlockSpec((tile_rows, hidden_p), lambda i: (i, 0)),
        ),
        compiler_params=pltpu.CompilerParams(
            dimension_semantics=("parallel",),
            vmem_limit_bytes=vmem_limit,
        ),
    )(x2d, w2d, b2d)

    out = out[:rows, :hidden]
    return out.reshape(orig_shape)


def _reference(x, weight, bias, eps):
    u = jnp.mean(x, axis=-1, keepdims=True)
    s = jnp.mean((x - u) ** 2, axis=-1, keepdims=True)
    return weight * ((x - u) / jnp.sqrt(s + eps)) + bias


if __name__ == "__main__":
    key = jax.random.PRNGKey(0)
    batch, seq, hidden = 2, 8, 32

    # Deterministic parameter init matching nn.Parameter(torch.ones/zeros(hidden))
    weight = jnp.ones((hidden,), dtype=jnp.float32)
    bias = jnp.zeros((hidden,), dtype=jnp.float32)

    x = jax.random.normal(key, (batch, seq, hidden), dtype=jnp.float32)
    y = jax.block_until_ready(layer_norm(x, weight, bias, eps=1e-12))
    ref = _reference(x, weight, bias, 1e-12)
    assert jnp.allclose(y, ref, atol=1e-5, rtol=1e-5), "mismatch vs reference"

    # Extra small check exercising the row-padding path (rows not a multiple
    # of the tile) and non-trivial weight/bias.
    k1, k2, k3 = jax.random.split(jax.random.PRNGKey(0), 3)
    x2 = jax.random.normal(k1, (3, 5, hidden), dtype=jnp.float32)
    w2 = jax.random.normal(k2, (hidden,), dtype=jnp.float32)
    b2 = jax.random.normal(k3, (hidden,), dtype=jnp.float32)
    y2 = jax.block_until_ready(layer_norm(x2, w2, b2, eps=1e-12))
    ref2 = _reference(x2, w2, b2, 1e-12)
    assert jnp.allclose(y2, ref2, atol=1e-5, rtol=1e-5), "mismatch (padded path)"

    print("KERNEL_OK")
</pallas_src>

<mosaic_0001>
module attributes {stable_mosaic.version = 11 : i64} {
  func.func @_layernorm_kernel(%arg0: i32, %arg1: memref<16x128xf32, #tpu.memory_space<vmem>>, %arg2: memref<1x128xf32, #tpu.memory_space<vmem>>, %arg3: memref<1x128xf32, #tpu.memory_space<vmem>>, %arg4: memref<16x128xf32, #tpu.memory_space<vmem>>) attributes {dimension_semantics = [#tpu.dimension_semantics<parallel>], iteration_bounds = array<i64: 1>, scalar_prefetch = 0 : i64, scratch_operands = 0 : i64, tpu.core_type = #tpu.core_type<tc>, window_params = [{transform_indices = @transform_0, window_bounds = array<i64: 16, 128>}, {pipeline_mode = #tpu.pipeline_mode<synchronous>, transform_indices = @transform_1, window_bounds = array<i64: 1, 128>}, {pipeline_mode = #tpu.pipeline_mode<synchronous>, transform_indices = @transform_2, window_bounds = array<i64: 1, 128>}, {transform_indices = @transform_3, window_bounds = array<i64: 16, 128>}]} {
    %c0 = arith.constant 0 : index
    %c0_0 = arith.constant 0 : index
    %0 = vector.load %arg1[%c0, %c0_0] : memref<16x128xf32, #tpu.memory_space<vmem>>, vector<16x128xf32>
    %cst = arith.constant dense<0.000000e+00> : vector<16xf32>
    %1 = vector.multi_reduction <add>, %0, %cst [1] : vector<16x128xf32> to vector<16xf32>
    %2 = vector.shape_cast %1 : vector<16xf32> to vector<16x1xf32>
    %cst_1 = arith.constant 3.125000e-02 : f32
    %3 = vector.broadcast %cst_1 : f32 to vector<16x1xf32>
    %4 = arith.mulf %2, %3 : vector<16x1xf32>
    %5 = vector.broadcast %4 : vector<16x1xf32> to vector<16x128xf32>
    %6 = arith.subf %0, %5 : vector<16x128xf32>
    %7 = tpu.iota {dimensions = array<i32: 1>} : vector<16x128xi32>
    %c32_i32 = arith.constant 32 : i32
    %8 = vector.broadcast %c32_i32 : i32 to vector<16x128xi32>
    %9 = arith.cmpi slt, %7, %8 : vector<16x128xi32>
    %cst_2 = arith.constant 0.000000e+00 : f32
    %10 = vector.broadcast %cst_2 : f32 to vector<16x128xf32>
    %11 = arith.select %9, %6, %10 : vector<16x128xi1>, vector<16x128xf32>
    %12 = arith.mulf %11, %11 : vector<16x128xf32>
    %cst_3 = arith.constant dense<0.000000e+00> : vector<16xf32>
    %13 = vector.multi_reduction <add>, %12, %cst_3 [1] : vector<16x128xf32> to vector<16xf32>
    %14 = vector.shape_cast %13 : vector<16xf32> to vector<16x1xf32>
    %cst_4 = arith.constant 3.125000e-02 : f32
    %15 = vector.broadcast %cst_4 : f32 to vector<16x1xf32>
    %16 = arith.mulf %14, %15 : vector<16x1xf32>
    %cst_5 = arith.constant 9.99999996E-13 : f32
    %17 = vector.broadcast %cst_5 : f32 to vector<16x1xf32>
    %18 = arith.addf %16, %17 : vector<16x1xf32>
    %19 = math.rsqrt %18 : vector<16x1xf32>
    %20 = vector.broadcast %19 : vector<16x1xf32> to vector<16x128xf32>
    %21 = arith.mulf %6, %20 : vector<16x128xf32>
    %c0_6 = arith.constant 0 : index
    %c0_7 = arith.constant 0 : index
    %22 = vector.load %arg2[%c0_6, %c0_7] : memref<1x128xf32, #tpu.memory_space<vmem>>, vector<1x128xf32>
    %c0_8 = arith.constant 0 : index
    %c0_9 = arith.constant 0 : index
    %23 = vector.load %arg3[%c0_8, %c0_9] : memref<1x128xf32, #tpu.memory_space<vmem>>, vector<1x128xf32>
    %24 = vector.broadcast %22 : vector<1x128xf32> to vector<16x128xf32>
    %25 = arith.mulf %24, %21 : vector<16x128xf32>
    %26 = vector.broadcast %23 : vector<1x128xf32> to vector<16x128xf32>
    %27 = arith.addf %25, %26 : vector<16x128xf32>
    %c0_10 = arith.constant 0 : index
    %c0_11 = arith.constant 0 : index
    %28 = vector.load %arg4[%c0_10, %c0_11] : memref<16x128xf32, #tpu.memory_space<vmem>>, vector<16x128xf32>
    tpu.vector_store %arg4[%c0_10, %c0_11], %27 {strides = array<i32>} : memref<16x128xf32, #tpu.memory_space<vmem>>, vector<16x128xf32>,
    return
  }
  func.func @transform_0(%arg0: i32) -> (i32, i32) {
    %c0_i32 = arith.constant 0 : i32
    %c0_i32_0 = arith.constant 0 : i32
    return %arg0, %c0_i32 : i32, i32
  }
  func.func @transform_1(%arg0: i32) -> (i32, i32) {
    %c0_i32 = arith.constant 0 : i32
    %c0_i32_0 = arith.constant 0 : i32
    %c0_i32_1 = arith.constant 0 : i32
    return %c0_i32, %c0_i32_0 : i32, i32
  }
  func.func @transform_2(%arg0: i32) -> (i32, i32) {
    %c0_i32 = arith.constant 0 : i32
    %c0_i32_0 = arith.constant 0 : i32
    %c0_i32_1 = arith.constant 0 : i32
    return %c0_i32, %c0_i32_0 : i32, i32
  }
  func.func @transform_3(%arg0: i32) -> (i32, i32) {
    %c0_i32 = arith.constant 0 : i32
    %c0_i32_0 = arith.constant 0 : i32
    return %arg0, %c0_i32 : i32, i32
  }
}

</mosaic_0001>

<bundles_post_ra>
// kernel: tpu_custom_call.1
= control target key start
LH: loop header
LB: loop body
LE: loop exit
PB: predicated region body
PF: predicated region fallthrough
CT: control target
= control target key end

     0   :  { %8 = vsyncpa [#allocation3], 0  ;;  %s258_s0 = inlined_call_operand.hbm [shape: f32[16,128], index: 0, kind: input, shape index: {}]   ;;  %s259_s1 = inlined_call_operand.hbm [shape: f32[1,128], index: 1, kind: input, shape index: {}]   ;;  %s260_s2 = inlined_call_operand.vmem [shape: f32[1,128], index: 2, kind: input, shape index: {}]   ;;  %s261_s3 = inlined_call_operand.hbm [shape: f32[16,128], index: 3, kind: output, shape index: {}]  }
   0x1   :  { %9 = vsyncpa [#allocation6], 0 }
   0x2   :  { %10 = vsyncpa [#allocation4], 0  ;;  %s15_s14 = sshll.u32 %s258_s0, 4  ;;  %s215_s15 = smov [#allocation2]   ;;  %s16_s14 = int_to_ptr.hbm [resolvable:$true] %s15_s14 }
   0x3   :  { %s17_s16 = sshll.u32 %s215_s15, 4  ;;  %s29_s19 = sshll.u32 %s259_s1, 4  ;;  %s18_s16 = int_to_ptr.vmem [resolvable:$true] %s17_s16  ;;  %s30_s19 = int_to_ptr.hbm [resolvable:$true] %s29_s19 }
   0x4   :  { %s216_s20 = smov 128   ;;  %s217_s21 = smov 8  }
   0x5   :  { %23 = dma.hbm_to_vmem [thread:$0]  %s16_s14, 256, %s18_s16, [#allocation3], %s216_s20, %s216_s20, %s217_s21  }
   0x6   :  { %s218_s22 = smov [#allocation5]  }
   0x7   :  { %s31_s23 = sshll.u32 %s218_s22, 4  ;;  %s32_s23 = int_to_ptr.vmem [resolvable:$true] %s31_s23 }
   0x8   :  { %34 = dma.hbm_to_vmem [thread:$0]  %s30_s19, 16, %s32_s23, [#allocation6]  }
   0x9   :  { %209 = dma.done.wait [#allocation3], 256  }
   0xa   :  { %210 = vsyncadd [#allocation3], 4294967040 }
   0xb   :  { %211 = dma.done.wait [#allocation6], 16  }
   0xc   :  { %212 = vsyncadd [#allocation6], 4294967280  ;;  %v45_v0 = vld [vmem:[#allocation2] sm:$0xff]  ;;  %v46_v1 = vld [vmem:[#allocation2 + $0x8] sm:$0xff]  ;;  %v55_v2 = vlaneseq  ;;  %s219_s24 = smov [#allocation7]   ;;  %s112_s28 = sshll.u32 %s261_s3, 4  ;;  %s113_s28 = int_to_ptr.hbm [resolvable:$true] %s112_s28 }
   0xd   :  { %47 = vadd.xlane.f32.xlu0 %v45_v0  ;;  %v131_v28 = vld [vmem:[#allocation5] ss:$0 sm:$0xff]  ;;  %v132_v32 = vld [vmem:[%s260_s2] ss:$0 sm:$0xff]  ;;  %s110_s25 = sshll.u32 %s219_s24, 4  ;;  %s111_s25 = int_to_ptr.vmem [resolvable:$true] %s110_s25 }
   0xe   :  { %v56_v3 = vand.u32 127, %v55_v2 }
  0x10   :  { %vm57_vm0 = vcmp.lt.s32.totalorder %v56_v3, 32 }
  0x15   :  { %49 = vadd.xlane.f32.xlu0 %v46_v1 }
  0x80   :  { %v48_v4 = vpop.xlane.xlu0 %47 }
  0x81   :  { %v51_v5 = vmul.f32 0.03125, %v48_v4 }
  0x83   :  { %v53_v6 = vsub.f32 %v45_v0, %v51_v5 }
  0x85   :  { %v58_v7 = vsel %vm57_vm0, %v53_v6, 0.0 }
  0x86   :  { %v60_v8 = vmul.f32 %v58_v7, %v58_v7 }
  0x88   :  { %62 = vadd.xlane.f32.xlu1 %v60_v8  ;;  %v50_v9 = vpop.xlane.xlu0 %49 }
  0x89   :  { %v52_v10 = vmul.f32 0.03125, %v50_v9 }
  0x8b   :  { %v54_v11 = vsub.f32 %v46_v1, %v52_v10 }
  0x8d   :  { %v59_v12 = vsel %vm57_vm0, %v54_v11, 0.0 }
  0x8e   :  { %v61_v13 = vmul.f32 %v59_v12, %v59_v12 }
  0x90   :  { %64 = vadd.xlane.f32.xlu1 %v61_v13 }
  0xfb   :  { %v63_v14 = vpop.xlane.xlu1 %62 }
  0xfc   :  { %v66_v15 = vmul.f32 0.03125, %v63_v14 }
  0xfe   :  { %v68_v16 = vadd.f32 1e-12, %v66_v15 }
 0x100   :  { %133 = vrsqrt.f32 %v68_v16  ;;  %vm76_vm2 = vweird.f32 %v68_v16 }
 0x103   :  { %v65_v17 = vpop.xlane.xlu1 %64 }
 0x104   :  { %v67_v18 = vmul.f32 0.03125, %v65_v17 }
 0x106   :  { %v134_v19 = vpop.eup %133  ;;  %v69_v20 = vadd.f32 1e-12, %v67_v18 }
 0x107   :  { %v71_v21 = vmul.f32 %v134_v19, %v68_v16  ;;  %vm77_vm1 = vweird.f32 %v134_v19 }
 0x108   :  { %135 = vrsqrt.f32 %v69_v20  ;;  %vm78_vm3 = vmor %vm76_vm2, %vm77_vm1  ;;  %vm86_vm5 = vweird.f32 %v69_v20 }
 0x109   :  { %v72_v22 = vmul.f32 %v134_v19, %v71_v21 }
 0x10b   :  { %v73_v23 = vmul.f32 0.5, %v72_v22 }
 0x10d   :  { %v74_v24 = vsub.f32 1.5, %v73_v23 }
 0x10e   :  { %v136_v25 = vpop.eup %135 }
 0x10f   :  { %v75_v26 = vmul.f32 %v134_v19, %v74_v24  ;;  %v81_v27 = vmul.f32 %v136_v25, %v69_v20  ;;  %vm87_vm4 = vweird.f32 %v136_v25 }
 0x110   :  { %vm88_vm6 = vmor %vm86_vm5, %vm87_vm4 }
 0x111   :  { %v79_v29 = vsel %vm78_vm3, %v134_v19, %v75_v26  ;;  %v82_v30 = vmul.f32 %v136_v25, %v81_v27 }
 0x112   :  { %v90_v31 = vmul.f32 %v79_v29, %v53_v6 }
 0x113   :  { %v83_v33 = vmul.f32 0.5, %v82_v30 }
 0x114   :  { %v97_v34 = vmul.f32 %v131_v28, %v90_v31 }
 0x115   :  { %v84_v35 = vsub.f32 1.5, %v83_v33 }
 0x116   :  { %v102_v36 = vadd.f32 %v132_v32, %v97_v34 }
 0x117   :  { %v85_v37 = vmul.f32 %v136_v25, %v84_v35 }
 0x118   :  { %104 = vst [vmem:[#allocation7] sm:$0xff] %v102_v36 }
 0x119   :  { %v89_v38 = vsel %vm88_vm6, %v136_v25, %v85_v37 }
 0x11a   :  { %v91_v39 = vmul.f32 %v89_v38, %v54_v11 }
 0x11c   :  { %v98_v40 = vmul.f32 %v131_v28, %v91_v39 }
 0x11e   :  { %v103_v41 = vadd.f32 %v132_v32, %v98_v40 }
 0x120   :  { %105 = vst [vmem:[#allocation7 + $0x8] sm:$0xff] %v103_v41 }
 0x121   :  { %118 = dma.vmem_to_hbm [thread:$0]  %s111_s25, 256, %s113_s28, [#allocation4], %s216_s20, %s216_s20, %s217_s21  }
 0x122   :  { %213 = dma.done.wait [#allocation4], 256  }
 0x123   :  { %214 = vsyncadd [#allocation4], 4294967040 }
 0x124   :  { %123 = vsyncpa [#allocation3], 1 }
 0x125   :  { %124 = vsyncpa [#allocation6], 1 }
 0x126   :  { %125 = vsyncpa [#allocation4], 1 }

</bundles_post_ra>
